<compile_context>
chip_gen: v7x
topology: tpu7x:2x2x1
jax: 0.10.0
libtpu: 0.0.40
codegen_flags: <defaults>
</compile_context>

<pallas_src>
import jax
import jax.numpy as jnp
from jax.experimental import pallas as pl
from jax.experimental.pallas import tpu as pltpu


def mlp_kernel(x_ref, w1_ref, b1_ref, w2_ref, b2_ref, w3_ref, b3_ref, out_ref):
    # x: (state_num, bt)  -- batch on lanes, features on sublanes.
    x = x_ref[...]

    # l1 + relu   (weights are (out, in) -> matmul LHS; f32 MXU accumulate)
    h = jnp.dot(w1_ref[...], x, preferred_element_type=jnp.float32) + b1_ref[...]
    h = jnp.maximum(h, 0.0)

    # l2 + relu
    h = jnp.dot(w2_ref[...], h, preferred_element_type=jnp.float32) + b2_ref[...]
    h = jnp.maximum(h, 0.0)

    # actor head (logits): (A, bt)
    act = jnp.dot(w3_ref[...], h, preferred_element_type=jnp.float32) + b3_ref[...]

    A = act.shape[0]
    if A == 2:
        # Pairwise VPU ops on sublane slices: no XLU cross-lane/sublane reduce.
        m = jnp.maximum(act[0:1, :], act[1:2, :])
        shifted = act - m
        e = jnp.exp(shifted)
        s = e[0:1, :] + e[1:2, :]
    else:
        m = jnp.max(act, axis=0, keepdims=True)
        shifted = act - m
        e = jnp.exp(shifted)
        s = jnp.sum(e, axis=0, keepdims=True)

    logprobs = shifted - jnp.log(s)
    # exp on the EUP slot; probs are exactly exp(logprobs) and sum to 1 in f32.
    probs = jnp.exp(logprobs)

    # Fused lane-dense output slab: rows [0:A) = probs, rows [A:2A) = logprobs.
    # Two direct slice stores; no concatenate temp / shuffle.
    out_ref[0:A, :] = probs
    out_ref[A:2 * A, :] = logprobs


def _round_up(n, m):
    return ((n + m - 1) // m) * m


def mlp_forward(x, params, *, block_cols=1024):
    """x: (batch, state_num) f32.  Returns (softmax, log_softmax), each (batch, actions_num)."""
    w1, b1, w2, b2, w3, b3 = params
    batch, state_num = x.shape
    actions_num = w3.shape[0]

    # Transpose so batch maps to lanes (trivial for a (batch, 4) array).
    xt = x.T  # (state_num, batch)

    # Lane tile: collapse the grid to one step for small rollouts; for long
    # rollouts use block_cols-wide tiles (multiple of 128 lanes).
    padded = _round_up(batch, 128)
    if padded <= block_cols:
        bt = padded
    else:
        padded = _round_up(batch, block_cols)
        bt = block_cols
    if padded != batch:
        xt = jnp.pad(xt, ((0, 0), (0, padded - batch)))
    grid = (padded // bt,)

    vmem = pltpu.MemorySpace.VMEM

    def col_spec(rows):
        # Tiled over the lane (batch) axis; feature axis is the full (tiny) height.
        return pl.BlockSpec((rows, bt), lambda i: (0, i), memory_space=vmem)

    def pinned(a):
        # Whole array, constant index_map: stays resident in VMEM across grid steps.
        return pl.BlockSpec(a.shape, lambda i: (0,) * a.ndim, memory_space=vmem)

    fused = pl.pallas_call(
        mlp_kernel,
        out_shape=jax.ShapeDtypeStruct((2 * actions_num, padded), jnp.float32),
        grid=grid,
        in_specs=[col_spec(state_num),
                  pinned(w1), pinned(b1),
                  pinned(w2), pinned(b2),
                  pinned(w3), pinned(b3)],
        out_specs=col_spec(2 * actions_num),
        compiler_params=pltpu.CompilerParams(
            # Only matters when the grid has >1 step (long rollouts); harmless here.
            dimension_semantics=("parallel",)),
    )(xt, w1, b1, w2, b2, w3, b3)

    probs = fused[:actions_num, :batch].T
    logprobs = fused[actions_num:, :batch].T
    return probs, logprobs


def init_params(key, state_num, H, actions_num):
    """Deterministic init mimicking torch.nn.Linear; weights kept in PyTorch's
    native (out_features, in_features) layout, biases as (out_features, 1)."""
    ks = jax.random.split(key, 6)

    def linear(kw, kb, fan_in, fan_out):
        bound = 1.0 / jnp.sqrt(fan_in)
        w = jax.random.uniform(kw, (fan_out, fan_in), jnp.float32, -bound, bound)
        b = jax.random.uniform(kb, (fan_out, 1), jnp.float32, -bound, bound)
        return w, b

    w1, b1 = linear(ks[0], ks[1], state_num, H)
    w2, b2 = linear(ks[2], ks[3], H, H)
    w3, b3 = linear(ks[4], ks[5], H, actions_num)
    return (w1, b1, w2, b2, w3, b3)


def ref_forward(x, params):
    w1, b1, w2, b2, w3, b3 = params
    h = jax.nn.relu(x @ w1.T + b1.T)
    h = jax.nn.relu(h @ w2.T + b2.T)
    act = h @ w3.T + b3.T
    return jax.nn.softmax(act, axis=-1), jax.nn.log_softmax(act, axis=-1)


if __name__ == "__main__":
    # CartPole-like sizes: state_num=4, hidden=32, actions_num=2.
    # batch=200 models a whole rollout processed in ONE pallas_call
    # (pads to 256 lanes -> grid of 1, weights pinned in VMEM).
    state_num, H, actions_num, batch = 4, 32, 2, 200

    key = jax.random.PRNGKey(0)
    k_x, k_p = jax.random.split(key)
    x = jax.random.normal(k_x, (batch, state_num), jnp.float32)
    params = init_params(k_p, state_num, H, actions_num)

    # x.view(-1, state_num) equivalent (glue in plain JAX)
    flat = x.reshape(-1, state_num)

    probs, logprobs = mlp_forward(flat, params)
    probs, logprobs = jax.block_until_ready((probs, logprobs))

    assert probs.shape == (batch, actions_num)
    assert logprobs.shape == (batch, actions_num)

    # Correctness: probs = exp(logprobs) exactly; sums to 1 at f32 precision.
    assert jnp.allclose(jnp.sum(probs, axis=-1), 1.0, atol=1e-5)
    assert jnp.allclose(jnp.exp(logprobs), probs, atol=1e-6)

    # Correctness vs pure-JAX reference (tolerances absorb XLA matmul precision).
    ref_p, ref_lp = ref_forward(flat, params)
    assert jnp.allclose(probs, ref_p, atol=2e-3)
    assert jnp.allclose(logprobs, ref_lp, atol=2e-3)

    print("KERNEL_OK")
</pallas_src>

<mosaic_0001>
module attributes {stable_mosaic.version = 11 : i64} {
  func.func @mlp_kernel(%arg0: i32, %arg1: memref<4x256xf32, #tpu.memory_space<vmem>>, %arg2: memref<32x4xf32, #tpu.memory_space<vmem>>, %arg3: memref<32x1xf32, #tpu.memory_space<vmem>>, %arg4: memref<32x32xf32, #tpu.memory_space<vmem>>, %arg5: memref<32x1xf32, #tpu.memory_space<vmem>>, %arg6: memref<2x32xf32, #tpu.memory_space<vmem>>, %arg7: memref<2x1xf32, #tpu.memory_space<vmem>>, %arg8: memref<4x256xf32, #tpu.memory_space<vmem>>) attributes {dimension_semantics = [#tpu.dimension_semantics<parallel>], iteration_bounds = array<i64: 1>, scalar_prefetch = 0 : i64, scratch_operands = 0 : i64, tpu.core_type = #tpu.core_type<tc>, window_params = [{transform_indices = @transform_0, window_bounds = array<i64: 4, 256>}, {pipeline_mode = #tpu.pipeline_mode<synchronous>, transform_indices = @transform_1, window_bounds = array<i64: 32, 4>}, {pipeline_mode = #tpu.pipeline_mode<synchronous>, transform_indices = @transform_2, window_bounds = array<i64: 32, 1>}, {pipeline_mode = #tpu.pipeline_mode<synchronous>, transform_indices = @transform_3, window_bounds = array<i64: 32, 32>}, {pipeline_mode = #tpu.pipeline_mode<synchronous>, transform_indices = @transform_4, window_bounds = array<i64: 32, 1>}, {pipeline_mode = #tpu.pipeline_mode<synchronous>, transform_indices = @transform_5, window_bounds = array<i64: 2, 32>}, {pipeline_mode = #tpu.pipeline_mode<synchronous>, transform_indices = @transform_6, window_bounds = array<i64: 2, 1>}, {transform_indices = @transform_7, window_bounds = array<i64: 4, 256>}]} {
    %c0 = arith.constant 0 : index
    %c0_0 = arith.constant 0 : index
    %0 = vector.load %arg1[%c0, %c0_0] : memref<4x256xf32, #tpu.memory_space<vmem>>, vector<4x256xf32>
    %c0_1 = arith.constant 0 : index
    %c0_2 = arith.constant 0 : index
    %1 = vector.load %arg2[%c0_1, %c0_2] : memref<32x4xf32, #tpu.memory_space<vmem>>, vector<32x4xf32>
    %cst = arith.constant dense<0.000000e+00> : vector<32x256xf32>
    %2 = tpu.matmul %1, %0, %cst {dimension_numbers = #tpu.dot_dimension_numbers<[1], [0], [0], [1], [0, 0, 1, 1], [], []>} : vector<32x4xf32>, vector<4x256xf32>, vector<32x256xf32> -> vector<32x256xf32>
    %c0_3 = arith.constant 0 : index
    %c0_4 = arith.constant 0 : index
    %3 = vector.load %arg3[%c0_3, %c0_4] : memref<32x1xf32, #tpu.memory_space<vmem>>, vector<32x1xf32>
    %4 = vector.broadcast %3 : vector<32x1xf32> to vector<32x256xf32>
    %5 = arith.addf %2, %4 : vector<32x256xf32>
    %cst_5 = arith.constant 0.000000e+00 : f32
    %6 = vector.broadcast %cst_5 : f32 to vector<32x256xf32>
    %7 = arith.maximumf %5, %6 : vector<32x256xf32>
    %c0_6 = arith.constant 0 : index
    %c0_7 = arith.constant 0 : index
    %8 = vector.load %arg4[%c0_6, %c0_7] : memref<32x32xf32, #tpu.memory_space<vmem>>, vector<32x32xf32>
    %cst_8 = arith.constant dense<0.000000e+00> : vector<32x256xf32>
    %9 = tpu.matmul %8, %7, %cst_8 {dimension_numbers = #tpu.dot_dimension_numbers<[1], [0], [0], [1], [0, 0, 1, 1], [], []>} : vector<32x32xf32>, vector<32x256xf32>, vector<32x256xf32> -> vector<32x256xf32>
    %c0_9 = arith.constant 0 : index
    %c0_10 = arith.constant 0 : index
    %10 = vector.load %arg5[%c0_9, %c0_10] : memref<32x1xf32, #tpu.memory_space<vmem>>, vector<32x1xf32>
    %11 = vector.broadcast %10 : vector<32x1xf32> to vector<32x256xf32>
    %12 = arith.addf %9, %11 : vector<32x256xf32>
    %cst_11 = arith.constant 0.000000e+00 : f32
    %13 = vector.broadcast %cst_11 : f32 to vector<32x256xf32>
    %14 = arith.maximumf %12, %13 : vector<32x256xf32>
    %c0_12 = arith.constant 0 : index
    %c0_13 = arith.constant 0 : index
    %15 = vector.load %arg6[%c0_12, %c0_13] : memref<2x32xf32, #tpu.memory_space<vmem>>, vector<2x32xf32>
    %cst_14 = arith.constant dense<0.000000e+00> : vector<2x256xf32>
    %16 = tpu.matmul %15, %14, %cst_14 {dimension_numbers = #tpu.dot_dimension_numbers<[1], [0], [0], [1], [0, 0, 1, 1], [], []>} : vector<2x32xf32>, vector<32x256xf32>, vector<2x256xf32> -> vector<2x256xf32>
    %c0_15 = arith.constant 0 : index
    %c0_16 = arith.constant 0 : index
    %17 = vector.load %arg7[%c0_15, %c0_16] : memref<2x1xf32, #tpu.memory_space<vmem>>, vector<2x1xf32>
    %18 = vector.broadcast %17 : vector<2x1xf32> to vector<2x256xf32>
    %19 = arith.addf %16, %18 : vector<2x256xf32>
    %20 = vector.extract_strided_slice %19 {offsets = [0, 0], sizes = [1, 256], strides = [1, 1]} : vector<2x256xf32> to vector<1x256xf32>
    %21 = vector.extract_strided_slice %19 {offsets = [1, 0], sizes = [1, 256], strides = [1, 1]} : vector<2x256xf32> to vector<1x256xf32>
    %22 = arith.maximumf %20, %21 : vector<1x256xf32>
    %23 = vector.broadcast %22 : vector<1x256xf32> to vector<2x256xf32>
    %24 = arith.subf %19, %23 : vector<2x256xf32>
    %25 = math.exp %24 : vector<2x256xf32>
    %26 = vector.extract_strided_slice %25 {offsets = [0, 0], sizes = [1, 256], strides = [1, 1]} : vector<2x256xf32> to vector<1x256xf32>
    %27 = vector.extract_strided_slice %25 {offsets = [1, 0], sizes = [1, 256], strides = [1, 1]} : vector<2x256xf32> to vector<1x256xf32>
    %28 = arith.addf %26, %27 : vector<1x256xf32>
    %29 = math.log %28 : vector<1x256xf32>
    %30 = vector.broadcast %29 : vector<1x256xf32> to vector<2x256xf32>
    %31 = arith.subf %24, %30 : vector<2x256xf32>
    %32 = math.exp %31 : vector<2x256xf32>
    %c0_17 = arith.constant 0 : index
    %c0_18 = arith.constant 0 : index
    %33 = vector.load %arg8[%c0_17, %c0_18] : memref<4x256xf32, #tpu.memory_space<vmem>>, vector<2x256xf32>
    tpu.vector_store %arg8[%c0_17, %c0_18], %32 {strides = array<i32>} : memref<4x256xf32, #tpu.memory_space<vmem>>, vector<2x256xf32>,
    %c2 = arith.constant 2 : index
    %c0_19 = arith.constant 0 : index
    %34 = vector.load %arg8[%c2, %c0_19] : memref<4x256xf32, #tpu.memory_space<vmem>>, vector<2x256xf32>
    tpu.vector_store %arg8[%c2, %c0_19], %31 {strides = array<i32>} : memref<4x256xf32, #tpu.memory_space<vmem>>, vector<2x256xf32>,
    return
  }
  func.func @transform_0(%arg0: i32) -> (i32, i32) {
    %c0_i32 = arith.constant 0 : i32
    %c0_i32_0 = arith.constant 0 : i32
    return %c0_i32, %arg0 : i32, i32
  }
  func.func @transform_1(%arg0: i32) -> (i32, i32) {
    %c0_i32 = arith.constant 0 : i32
    %c0_i32_0 = arith.constant 0 : i32
    %c0_i32_1 = arith.constant 0 : i32
    return %c0_i32, %c0_i32_0 : i32, i32
  }
  func.func @transform_2(%arg0: i32) -> (i32, i32) {
    %c0_i32 = arith.constant 0 : i32
    %c0_i32_0 = arith.constant 0 : i32
    %c0_i32_1 = arith.constant 0 : i32
    return %c0_i32, %c0_i32_0 : i32, i32
  }
  func.func @transform_3(%arg0: i32) -> (i32, i32) {
    %c0_i32 = arith.constant 0 : i32
    %c0_i32_0 = arith.constant 0 : i32
    %c0_i32_1 = arith.constant 0 : i32
    return %c0_i32, %c0_i32_0 : i32, i32
  }
  func.func @transform_4(%arg0: i32) -> (i32, i32) {
    %c0_i32 = arith.constant 0 : i32
    %c0_i32_0 = arith.constant 0 : i32
    %c0_i32_1 = arith.constant 0 : i32
    return %c0_i32, %c0_i32_0 : i32, i32
  }
  func.func @transform_5(%arg0: i32) -> (i32, i32) {
    %c0_i32 = arith.constant 0 : i32
    %c0_i32_0 = arith.constant 0 : i32
    %c0_i32_1 = arith.constant 0 : i32
    return %c0_i32, %c0_i32_0 : i32, i32
  }
  func.func @transform_6(%arg0: i32) -> (i32, i32) {
    %c0_i32 = arith.constant 0 : i32
    %c0_i32_0 = arith.constant 0 : i32
    %c0_i32_1 = arith.constant 0 : i32
    return %c0_i32, %c0_i32_0 : i32, i32
  }
  func.func @transform_7(%arg0: i32) -> (i32, i32) {
    %c0_i32 = arith.constant 0 : i32
    %c0_i32_0 = arith.constant 0 : i32
    return %c0_i32, %arg0 : i32, i32
  }
}

</mosaic_0001>

<bundles_post_ra>
// kernel: tpu_custom_call.1
= control target key start
LH: loop header
LB: loop body
LE: loop exit
PB: predicated region body
PF: predicated region fallthrough
CT: control target
= control target key end

     0   :  { %vm71_vm0 = vcmask 1043456   ;;  %v534_v2 = vmov 0.0   ;;  %vm58_vm1 = vcmask 31744   ;;  %v535_v5 = vmov 0   ;;  %s664_s0 = inlined_call_operand.vmem [shape: f32[4,256], index: 0, kind: input, shape index: {}]   ;;  %s665_s1 = inlined_call_operand.vmem [shape: f32[32,4], index: 1, kind: input, shape index: {}]   ;;  %s666_s2 = inlined_call_operand.vmem [shape: f32[32,1], index: 2, kind: input, shape index: {}]   ;;  %s667_s3 = inlined_call_operand.vmem [shape: f32[32,32], index: 3, kind: input, shape index: {}]   ;;  %s668_s4 = inlined_call_operand.vmem [shape: f32[32,1], index: 4, kind: input, shape index: {}]   ;;  %s669_s5 = inlined_call_operand.vmem [shape: f32[2,32], index: 5, kind: input, shape index: {}]   ;;  %s670_s6 = inlined_call_operand.vmem [shape: f32[2,1], index: 6, kind: input, shape index: {}]   ;;  %s671_s7 = inlined_call_operand.hbm [shape: f32[4,256], index: 7, kind: output, shape index: {}]  }
   0x1   :  { %v27_v0 = vld [vmem:[%s664_s0] sm:$0xff]  ;;  %140 = vmatprep.mubr.f32.mxu0 %v534_v2  ;;  %278 = vmatprep.mubr.f32.mxu1 %v534_v2  ;;  %v34_v6 = vld [vmem:[%s666_s2 + $0x10] sm:$0xff]  ;;  %v33_v7 = vld [vmem:[%s666_s2 + $0x8] sm:$0xff] }
   0x2   :  { %v57_v1 = vcombine.high %v27_v0, %v27_v0  ;;  %v32_v3 = vld [vmem:[%s666_s2] sm:$0xff]  ;;  %495 = vset.pattern.permute.xlu0 %v535_v5  ;;  %496 = vset.pattern.permute.xlu1 %v535_v5 }
   0x3   :  { %v28_v4 = vld [vmem:[%s665_s1] sm:$0xff]  ;;  %38 = vperm.xlu0 %495, %v32_v3   ;;  %48 = vperm.xlu1 %496, %v34_v6  }
   0x4   :  { %465 = vmatprep.subr.msk.mxu0 %vm71_vm0, %v57_v1 }
   0x5   :  { %466 = vmatpush1.msk.msra.mxu0 %vm71_vm0, %v27_v0 }
   0x6   :  { %12 = vsyncpa [#allocation3], 0  ;;  %467 = vmatmul.mubr.msk.f32.vlgmr.msra.gmra.mrb[0].mxu0 %vm58_vm1, %v28_v4  ;;  %v35_v8 = vld [vmem:[%s666_s2 + $0x18] sm:$0xff]  ;;  %v29_v9 = vld [vmem:[%s665_s1 + $0x8] sm:$0xff]  ;;  %vm201_vm2 = vcmask 261120  }
   0x7   :  { %146 = vmatprep.mubr.f32.mxu0 %v534_v2  ;;  %43 = vperm.xlu0 %495, %v33_v7   ;;  %v177_v10 = vld [vmem:[%s668_s4] sm:$0xff]  ;;  %v178_v11 = vld [vmem:[%s668_s4 + $0x8] sm:$0xff]  ;;  %v30_v12 = vld [vmem:[%s665_s1 + $0x10] sm:$0xff] }
   0x8   :  { %53 = vperm.xlu1 %496, %v35_v8   ;;  %v179_v13 = vld [vmem:[%s668_s4 + $0x10] sm:$0xff]  ;;  %v180_v14 = vld [vmem:[%s668_s4 + $0x18] sm:$0xff]  ;;  %v312_v16 = vld [vmem:[%s670_s6] sm:$0x3] }
   0x9   :  { %v31_v15 = vld [vmem:[%s665_s1 + $0x18] sm:$0xff]  ;;  %v173_v49 = vld [vmem:[%s667_s3] sm:$0xff]  ;;  %v174_v50 = vld [vmem:[%s667_s3 + $0x8] sm:$0xff] }
   0xa   :  { %468 = vmatmul.mubr.msk.f32.gmra.mrb[2].mxu0 %vm58_vm1, %v29_v9  ;;  %v175_v51 = vld [vmem:[%s667_s3 + $0x10] sm:$0xff]  ;;  %v176_v52 = vld [vmem:[%s667_s3 + $0x18] sm:$0xff] }
   0xb   :  { %152 = vmatprep.mubr.f32.mxu0 %v534_v2  ;;  %183 = vperm.xlu0 %495, %v177_v10  }
   0xc   :  { %188 = vperm.xlu1 %496, %v178_v11  }
   0xe   :  { %469 = vmatmul.mubr.msk.f32.gmra.mrb[4].mxu0 %vm58_vm1, %v30_v12 }
   0xf   :  { %158 = vmatprep.mubr.f32.mxu0 %v534_v2  ;;  %193 = vperm.xlu0 %495, %v179_v13  }
  0x10   :  { %198 = vperm.xlu1 %496, %v180_v14  }
  0x12   :  { %470 = vmatmul.mubr.msk.f32.gmra.mrb[6].mxu0 %vm58_vm1, %v31_v15 }
  0x13   :  { %385 = vmatprep.mubr.f32.mxu0 %v534_v2  ;;  %315 = vperm.xlu0 %495, %v312_v16  }
  0x82   :  { %v39_v17 = vpop.permute.xlu0 %38  ;;  %v49_v26 = vpop.permute.xlu1 %48 }
  0x86   :  { %v44_v21 = vpop.permute.xlu0 %43 }
  0x87   :  { %v54_v37 = vpop.permute.xlu1 %53 }
  0x8a   :  { %v184_v55 = vpop.permute.xlu0 %183 }
  0x8b   :  { %v189_v57 = vpop.permute.xlu1 %188 }
  0x8e   :  { %v194_v6 = vpop.permute.xlu0 %193 }
  0x8f   :  { %v199_v9 = vpop.permute.xlu1 %198 }
  0xd9   :  { %v142_v18 = vpop.f32.mrb[0].mxu0 }
  0xda   :  { %v144_v19 = vpop.f32.mrb[1].mxu0  ;;  %v143_v20 = vadd.f32 %v142_v18, %v39_v17 }
  0xdb   :  { %v145_v22 = vadd.f32 %v144_v19, %v39_v17 }
  0xdc   :  { %v165_v28 = vmax.f32 %v143_v20, 0.0 }
  0xdd   :  { %v148_v23 = vpop.f32.mrb[2].mxu0  ;;  %v166_v30 = vmax.f32 %v145_v22, 0.0  ;;  %v400_v22 = vlaneseq }
  0xde   :  { %v149_v24 = vadd.f32 %v148_v23, %v44_v21  ;;  %v150_v25 = vpop.f32.mrb[3].mxu0 }
  0xdf   :  { %v151_v27 = vadd.f32 %v150_v25, %v44_v21  ;;  %v311_v21 = vld [vmem:[%s669_s5] sm:$0x3]  ;;  %v401_v23 = vshrl.u32 %v400_v22, 7  ;;  %s536_s5 = smov [#allocation2]  }
  0xe0   :  { %v167_v29 = vmax.f32 %v149_v24, 0.0  ;;  %v316_v24 = vpop.permute.xlu0 %315  ;;  %s457_s9 = sshll.u32 %s536_s5, 4  ;;  %s458_s9 = int_to_ptr.vmem [resolvable:$true] %s457_s9 }
  0xe1   :  { %v168_v31 = vmax.f32 %v151_v27, 0.0  ;;  %v154_v32 = vpop.f32.mrb[4].mxu0  ;;  %s510_s10 = scalar_lea.vmem %s458_s9, 128  ;;  %p515_p1 = scmp.lt.s32.totalorder %s458_s9, %s458_s9 }
  0xe2   :  { %v156_v33 = vpop.f32.mrb[5].mxu0  ;;  %v478_v34 = vpack.c.bf16 %v167_v29, %v165_v28  ;;  %v155_v36 = vadd.f32 %v154_v32, %v49_v26  ;;  %p511_p0 = scmp.ne.s32.totalorder %s458_s9, %s510_s10  ;;  %p516_p2 = scmp.lt.s32.totalorder %s510_s10, %s510_s10 }
  0xe3   :  { %v476_v35 = vpack.c.bf16 %v168_v31, %v166_v30  ;;  %v157_v38 = vadd.f32 %v156_v33, %v49_v26  ;;  %v402_v30 = vsub.s32 0, %v401_v23 }
  0xe4   :  { %v169_v43 = vmax.f32 %v155_v36, 0.0  ;;  %p517_p3 = por %p516_p2, %p515_p1 }
  0xe5   :  { %v160_v39 = vpop.f32.mrb[6].mxu0  ;;  %477 = vmatprep.subr.bf16.mxu1 %v476_v35  ;;  %v170_v45 = vmax.f32 %v157_v38, 0.0 }
  0xe6   :  { %v161_v40 = vadd.f32 %v160_v39, %v54_v37  ;;  %v162_v41 = vpop.f32.mrb[7].mxu0  ;;  %479 = vmatpush1.bf16.msra.mxu1 %v478_v34  ;;  %p518_p4 = pnand %p517_p3, %p511_p0 }
  0xe7   :  { %v163_v42 = vadd.f32 %v162_v41, %v54_v37 }
  0xe8   :  { %v171_v44 = vmax.f32 %v161_v40, 0.0 }
  0xe9   :  { %v172_v46 = vmax.f32 %v163_v42, 0.0 }
  0xea   :  { %v482_v47 = vpack.c.bf16 %v171_v44, %v169_v43 }
  0xeb   :  { %v480_v48 = vpack.c.bf16 %v172_v46, %v170_v45 }
  0xed   :  { %481 = vmatprep.subr.bf16.mxu1 %v480_v48 }
  0xee   :  { %483 = vmatpush1.bf16.msra.mxu1 %v482_v47 }
  0xf1   :  { %471 = vmatmul.mubr.msk.f32.vlgmr.msra.gmra.mrb[0].mxu1 %vm201_vm2, %v173_v49 }
  0xf2   :  { %284 = vmatprep.mubr.f32.mxu1 %v534_v2 }
  0xf5   :  { %472 = vmatmul.mubr.msk.f32.gmra.mrb[2].mxu1 %vm201_vm2, %v174_v50 }
  0xf6   :  { %290 = vmatprep.mubr.f32.mxu1 %v534_v2 }
  0xf9   :  { %473 = vmatmul.mubr.msk.f32.gmra.mrb[4].mxu1 %vm201_vm2, %v175_v51 }
  0xfa   :  { %296 = vmatprep.mubr.f32.mxu1 %v534_v2 }
  0xfd   :  { %474 = vmatmul.mubr.msk.f32.gmra.mrb[6].mxu1 %vm201_vm2, %v176_v52 }
 0x1c4   :  { %v280_v53 = vpop.f32.mrb[0].mxu1 }
 0x1c5   :  { %v282_v54 = vpop.f32.mrb[1].mxu1  ;;  %v281_v56 = vadd.f32 %v280_v53, %v184_v55 }
 0x1c6   :  { %v283_v58 = vadd.f32 %v282_v54, %v184_v55 }
 0x1c7   :  { %v303_v63 = vmax.f32 %v281_v56, 0.0 }
 0x1c8   :  { %v286_v59 = vpop.f32.mrb[2].mxu1  ;;  %v304_v1 = vmax.f32 %v283_v58, 0.0 }
 0x1c9   :  { %v287_v60 = vadd.f32 %v286_v59, %v189_v57  ;;  %v288_v61 = vpop.f32.mrb[3].mxu1 }
 0x1ca   :  { %v289_v62 = vadd.f32 %v288_v61, %v189_v57 }
 0x1cb   :  { %v305_v0 = vmax.f32 %v287_v60, 0.0 }
 0x1cc   :  { %v306_v2 = vmax.f32 %v289_v62, 0.0  ;;  %v292_v3 = vpop.f32.mrb[4].mxu1 }
 0x1cd   :  { %v486_v4 = vpack.c.bf16 %v305_v0, %v303_v63  ;;  %v294_v5 = vpop.f32.mrb[5].mxu1  ;;  %v293_v8 = vadd.f32 %v292_v3, %v194_v6 }
 0x1ce   :  { %v484_v7 = vpack.c.bf16 %v306_v2, %v304_v1  ;;  %v295_v10 = vadd.f32 %v294_v5, %v194_v6 }
 0x1cf   :  { %v307_v15 = vmax.f32 %v293_v8, 0.0 }
 0x1d0   :  { %v298_v11 = vpop.f32.mrb[6].mxu1  ;;  %485 = vmatprep.subr.bf16.mxu0 %v484_v7  ;;  %v308_v17 = vmax.f32 %v295_v10, 0.0 }
 0x1d1   :  { %v299_v12 = vadd.f32 %v298_v11, %v199_v9  ;;  %v300_v13 = vpop.f32.mrb[7].mxu1  ;;  %487 = vmatpush1.bf16.msra.mxu0 %v486_v4 }
 0x1d2   :  { %v301_v14 = vadd.f32 %v300_v13, %v199_v9 }
 0x1d3   :  { %v309_v16 = vmax.f32 %v299_v12, 0.0 }
 0x1d4   :  { %v310_v18 = vmax.f32 %v301_v14, 0.0 }
 0x1d5   :  { %v490_v19 = vpack.c.bf16 %v309_v16, %v307_v15 }
 0x1d6   :  { %v488_v20 = vpack.c.bf16 %v310_v18, %v308_v17 }
 0x1d8   :  { %489 = vmatprep.subr.bf16.mxu0 %v488_v20 }
 0x1d9   :  { %491 = vmatpush1.bf16.msra.mxu0 %v490_v19 }
 0x1dc   :  { %475 = vmatmul.mubr.msk.f32.vlgmr.msra.gmra.mrb[8].mxu0 %vm201_vm2, %v311_v21 }
 0x2af   :  { %v387_v25 = vpop.f32.mrb[8].mxu0 }
 0x2b0   :  { %v388_v26 = vadd.f32 %v387_v25, %v316_v24  ;;  %v389_v27 = vpop.f32.mrb[9].mxu0 }
 0x2b1   :  { %v390_v28 = vadd.f32 %v389_v27, %v316_v24 }
 0x2b2   :  { %v394_v29 = vrot.slane %v388_v26, 1 }
 0x2b3   :  { %v395_v31 = vrot.slane %v390_v28, 1 }
 0x2b4   :  { %v398_v32 = vmax.f32 %v388_v26, %v394_v29 }
 0x2b5   :  { %v399_v33 = vmax.f32 %v390_v28, %v395_v31 }
 0x2b6   :  { %v403_v34 = vrot.slane %v398_v32, %v402_v30 }
 0x2b7   :  { %v407_v35 = vrot.slane %v399_v33, %v402_v30 }
 0x2b8   :  { %v408_v36 = vsub.f32 %v388_v26, %v403_v34 }
 0x2b9   :  { %v409_v37 = vsub.f32 %v390_v28, %v407_v35 }
 0x2ba   :  { %v410_v38 = vmul.f32 1.442695, %v408_v36 }
 0x2bb   :  { %v412_v39 = vmul.f32 1.442695, %v409_v37 }
 0x2bc   :  { %498 = vpow2.f32 %v410_v38 }
 0x2bd   :  { %500 = vpow2.f32 %v412_v39 }
 0x2c6   :  { %v499_v40 = vpop.eup %498 }
 0x2c7   :  { %v501_v41 = vpop.eup %500  ;;  %v416_v42 = vrot.slane %v499_v40, 1 }
 0x2c8   :  { %v417_v43 = vrot.slane %v501_v41, 1 }
 0x2c9   :  { %v420_v44 = vadd.f32 %v499_v40, %v416_v42 }
 0x2ca   :  { %v421_v45 = vadd.f32 %v501_v41, %v417_v43 }
 0x2cb   :  { %502 = vlog2.f32 %v420_v44 }
 0x2cc   :  { %504 = vlog2.f32 %v421_v45 }
 0x2d5   :  { %v503_v46 = vpop.eup %502 }
 0x2d6   :  { %v505_v47 = vpop.eup %504  ;;  %v423_v48 = vmul.f32 0.6931472, %v503_v46 }
 0x2d7   :  { %v425_v49 = vmul.f32 0.6931472, %v505_v47 }
 0x2d8   :  { %v429_v50 = vrot.slane %v423_v48, %v402_v30 }
 0x2d9   :  { %v433_v51 = vrot.slane %v425_v49, %v402_v30 }
 0x2da   :  { %v434_v52 = vsub.f32 %v408_v36, %v429_v50 }
 0x2db   :  { %v435_v53 = vsub.f32 %v409_v37, %v433_v51 }
 0x2dc   :  { %v436_v54 = vmul.f32 1.442695, %v434_v52 }
 0x2dd   :  { %v438_v55 = vmul.f32 1.442695, %v435_v53  ;;  %v447_v56 = vcombine.low %v434_v52, %v435_v53 }
 0x2de   :  { %506 = vpow2.f32 %v436_v54 }
 0x2df   :  { %508 = vpow2.f32 %v438_v55  ;;  %v448_v57 = vrot.slane %v447_v56, 6 }
 0x2e1   :  { %450 = vst [vmem:[#allocation2] sm:$0xcc] %v448_v57 }
 0x2e8   :  { %v507_v58 = vpop.eup %506 }
 0x2e9   :  { %v509_v59 = vpop.eup %508 }
 0x2ea   :  { %v442_v60 = vcombine.low %v507_v58, %v509_v59 }
 0x2ec   :  { %444 = vst [vmem:[#allocation2] sm:$0x33] %v442_v60 }
 0x2ed   :  { %521 = shalt.err (!%p518_p4)
}
 0x2ee   :  { %s522_s13 = scalar_lea.hbm %s671_s7, 128 }
 0x2ef   :  { %p523_p5 = scmp.ne.s32.totalorder %s671_s7, %s522_s13  ;;  %p526_p6 = scmp.lt.u32.totalorder %s522_s13, %s671_s7 }
 0x2f1   :  { %p528_p7 = pnand %p526_p6, %p523_p5 }
 0x2f3   :  { %531 = shalt.err (!%p528_p7)
}
 0x2f4   :  { %460 = dma.vmem_to_hbm [thread:$0]  %s458_s9, 128, %s671_s7, [#allocation3]  }
 0x2f5   :  { %532 = dma.done.wait [#allocation3], 128  }
 0x2f6   :  { %533 = vsyncadd [#allocation3], 4294967168 }
 0x2f7   :  { %464 = vsyncpa [#allocation3], 1 }

</bundles_post_ra>
